<compile_context>
chip_gen: v7x
topology: tpu7x:2x2x1
jax: 0.10.0
libtpu: 0.0.40
codegen_flags: <defaults>
</compile_context>

<pallas_src>
from functools import partial

import jax
import jax.numpy as jnp
from jax.experimental import pallas as pl
from jax.experimental.pallas import tpu as pltpu

IMG_H = IMG_W = 28       # small image; patchify stride-4 -> 7x7 spatial map
IN_CH = 3
PATCH = 4                # backbone stand-in: 4x4 / stride-4 conv
FEAT_CH = 64             # stand-in for densenet161's 2208 feature channels
POOL = 7                 # F.avg_pool2d(kernel_size=7) over the 7x7 feature map
EMBED = 32               # embed_size
BN_EPS = 1e-5            # torch.nn.BatchNorm1d default eps

K_IN = PATCH * PATCH * IN_CH   # 48 (patch-conv contraction dim)
K_PAD = 64                     # 48 patch dims + 1 bias column, zero-padded to 64
FEAT_PAD = 128                 # lane-dense feature width
EMBED_PAD = 128                # lane-dense embedding width (unmasked vst)


# ---------------------------------------------------------------------------
# Single fused kernel:
#   patchify-conv matmul (+ folded bias) + ReLU   (backbone stand-in, MXU, bf16)
#   -> avg_pool2d(7).view(B,-1) as a matmul with an in-kernel pooling matrix
#   -> Linear(FEAT_CH, EMBED) matmul (MXU, bf16, f32 accumulate)
#   -> Dropout(p=0.5) identity + eval-mode BatchNorm1d, both folded into one
#      per-column f32 scale/shift (VPU).
# ---------------------------------------------------------------------------
def fused_encoder_kernel(patches_ref, conv_w_ref, embed_w_ref,
                         scale_ref, shift_ref, out_ref, *, batch, spatial):
    # Backbone stand-in: patchify conv (+ bias via the ones column) + ReLU.
    # (m_pad, K_PAD)bf16 @ (K_PAD, FEAT_PAD)bf16 -> f32
    feat = jnp.dot(patches_ref[...], conv_w_ref[...],
                   preferred_element_type=jnp.float32)
    feat = jnp.maximum(feat, 0.0)                            # (m_pad, FEAT_PAD)

    # F.avg_pool2d(kernel_size=7).view(B, -1) as an MXU matmul against a
    # pooling matrix built in-kernel:
    #   pool[b, m] = 1/spatial  iff  b < batch  and  b*spatial <= m < (b+1)*spatial
    # Padded batch rows / padded feature rows contribute exactly zero.
    m_pad = patches_ref.shape[0]
    b_pad = out_ref.shape[0]
    rows = jax.lax.broadcasted_iota(jnp.int32, (b_pad, m_pad), 0)
    cols = jax.lax.broadcasted_iota(jnp.int32, (b_pad, m_pad), 1)
    pool = jnp.where((rows < batch)
                     & (cols >= rows * spatial)
                     & (cols < (rows + 1) * spatial),
                     jnp.float32(1.0 / spatial), jnp.float32(0.0))
    pooled = jnp.dot(pool, feat,
                     preferred_element_type=jnp.float32)     # (b_pad, FEAT_PAD)

    # nn.Linear(FEAT_CH, EMBED) weight matmul (bias handled in shift below).
    z = jnp.dot(pooled.astype(jnp.bfloat16), embed_w_ref[...],
                preferred_element_type=jnp.float32)          # (b_pad, EMBED_PAD)

    # nn.Dropout(p=0.5): identity (eval).  nn.BatchNorm1d (eval, running stats)
    # combined with the Linear bias into: out = scale * z + shift.
    out_ref[...] = z * scale_ref[...] + shift_ref[...]


@jax.jit
def encoder_forward(images_nchw, conv_w, conv_b, embed_w, embed_b,
                    bn_gamma, bn_beta, bn_running_mean, bn_running_var):
    B = images_nchw.shape[0]
    gh, gw = IMG_H // PATCH, IMG_W // PATCH                  # 7, 7
    spatial = gh * gw                                        # 49
    M = B * spatial                                          # 98 at B=2

    b_pad = max(8, ((B + 7) // 8) * 8)                       # 8
    m_pad = max(8, ((M + 7) // 8) * 8)                       # 104

    # NCHW (torch) -> NHWC, then non-overlapping 4x4 patch extraction (glue).
    x = jnp.transpose(images_nchw, (0, 2, 3, 1))             # (B, H, W, C)
    patches = x.reshape(B, gh, PATCH, gw, PATCH, IN_CH)
    patches = patches.transpose(0, 1, 3, 2, 4, 5).reshape(M, K_IN)   # (98, 48)

    # Append the bias "ones" column (real rows only -> padded rows stay zero),
    # then zero-pad with jnp.pad and cast to bf16 (MXU-native, half the DMA).
    patches_aug = jnp.concatenate(
        [patches, jnp.ones((M, 1), patches.dtype)], axis=1)          # (M, 49)
    patches_p = jnp.pad(
        patches_aug, ((0, m_pad - M), (0, K_PAD - (K_IN + 1)))
    ).astype(jnp.bfloat16)                                           # (104, 64)

    # Conv weight with the bias appended as the matching extra row.
    conv_wb = jnp.concatenate([conv_w, conv_b], axis=0)              # (49, 64)
    conv_wb_p = jnp.pad(
        conv_wb, ((0, K_PAD - (K_IN + 1)), (0, FEAT_PAD - FEAT_CH))
    ).astype(jnp.bfloat16)                                           # (64, 128)

    embed_w_p = jnp.pad(
        embed_w, ((0, FEAT_PAD - FEAT_CH), (0, EMBED_PAD - EMBED))
    ).astype(jnp.bfloat16)                                           # (128, 128)

    # Eval-mode BatchNorm1d folded with the Linear bias into one affine:
    #   bn(z + b) = gamma*(z + b - mean)/sqrt(var+eps) + beta = scale*z + shift
    scale = bn_gamma * jax.lax.rsqrt(bn_running_var + BN_EPS)        # (1, 32)
    shift = bn_beta + scale * (embed_b - bn_running_mean)            # (1, 32)
    scale_p = jnp.pad(scale, ((0, 0), (0, EMBED_PAD - EMBED)))       # (1, 128)
    shift_p = jnp.pad(shift, ((0, 0), (0, EMBED_PAD - EMBED)))       # (1, 128)

    out_full = pl.pallas_call(
        partial(fused_encoder_kernel, batch=B, spatial=spatial),
        out_shape=jax.ShapeDtypeStruct((b_pad, EMBED_PAD), jnp.float32),
        in_specs=[pl.BlockSpec(memory_space=pltpu.MemorySpace.VMEM)] * 5,
        out_specs=pl.BlockSpec(memory_space=pltpu.MemorySpace.VMEM),
        compiler_params=pltpu.CompilerParams(
            allow_input_fusion=[True, True, True, True, True]),
    )(patches_p, conv_wb_p, embed_w_p, scale_p, shift_p)

    # Strip the batch / embed padding back off.
    return out_full[:B, :EMBED]


if __name__ == "__main__":
    key = jax.random.PRNGKey(0)
    k_img, k_cw, k_cb, k_ew, k_eb = jax.random.split(key, 5)

    # Deterministic synthetic parameters (module __init__ shapes, scaled down).
    images = jax.random.normal(k_img, (2, IN_CH, IMG_H, IMG_W), jnp.float32)
    conv_w = 0.05 * jax.random.normal(k_cw, (K_IN, FEAT_CH), jnp.float32)
    conv_b = 0.01 * jax.random.normal(k_cb, (1, FEAT_CH), jnp.float32)
    embed_w = 0.05 * jax.random.normal(k_ew, (FEAT_CH, EMBED), jnp.float32)  # Linear weight^T
    embed_b = 0.01 * jax.random.normal(k_eb, (1, EMBED), jnp.float32)
    bn_gamma = jnp.ones((1, EMBED), jnp.float32)    # BatchNorm1d affine init
    bn_beta = jnp.zeros((1, EMBED), jnp.float32)
    bn_running_mean = jnp.zeros((1, EMBED), jnp.float32)   # BN buffers at init
    bn_running_var = jnp.ones((1, EMBED), jnp.float32)

    out = encoder_forward(images, conv_w, conv_b, embed_w, embed_b,
                          bn_gamma, bn_beta, bn_running_mean, bn_running_var)
    out = jax.block_until_ready(out)
    assert out.shape == (2, EMBED) and out.dtype == jnp.float32
    assert bool(jnp.all(jnp.isfinite(out)))
    print("KERNEL_OK")
</pallas_src>

<mosaic_0001>
module attributes {stable_mosaic.version = 11 : i64} {
  func.func @fused_encoder_kernel(%arg0: memref<104x64xbf16, #tpu.memory_space<vmem>>, %arg1: memref<64x128xbf16, #tpu.memory_space<vmem>>, %arg2: memref<128x128xbf16, #tpu.memory_space<vmem>>, %arg3: memref<1x128xf32, #tpu.memory_space<vmem>>, %arg4: memref<1x128xf32, #tpu.memory_space<vmem>>, %arg5: memref<8x128xf32, #tpu.memory_space<vmem>>) attributes {dimension_semantics = [], scalar_prefetch = 0 : i64, scratch_operands = 0 : i64, tpu.core_type = #tpu.core_type<tc>} {
    %c0 = arith.constant 0 : index
    %c0_0 = arith.constant 0 : index
    %0 = vector.load %arg0[%c0, %c0_0] : memref<104x64xbf16, #tpu.memory_space<vmem>>, vector<104x64xbf16>
    %c0_1 = arith.constant 0 : index
    %c0_2 = arith.constant 0 : index
    %1 = vector.load %arg1[%c0_1, %c0_2] : memref<64x128xbf16, #tpu.memory_space<vmem>>, vector<64x128xbf16>
    %cst = arith.constant dense<0.000000e+00> : vector<104x128xf32>
    %2 = tpu.matmul %0, %1, %cst {dimension_numbers = #tpu.dot_dimension_numbers<[1], [0], [0], [1], [0, 0, 1, 1], [], []>} : vector<104x64xbf16>, vector<64x128xbf16>, vector<104x128xf32> -> vector<104x128xf32>
    %cst_3 = arith.constant 0.000000e+00 : f32
    %3 = vector.broadcast %cst_3 : f32 to vector<104x128xf32>
    %4 = arith.maximumf %2, %3 : vector<104x128xf32>
    %5 = tpu.iota {dimensions = array<i32: 0>} : vector<8x104xi32>
    %6 = tpu.iota {dimensions = array<i32: 1>} : vector<8x104xi32>
    %c2_i32 = arith.constant 2 : i32
    %7 = vector.broadcast %c2_i32 : i32 to vector<8x104xi32>
    %8 = arith.cmpi slt, %5, %7 : vector<8x104xi32>
    %c49_i32 = arith.constant 49 : i32
    %9 = vector.broadcast %c49_i32 : i32 to vector<8x104xi32>
    %10 = arith.muli %5, %9 : vector<8x104xi32>
    %11 = arith.cmpi sge, %6, %10 : vector<8x104xi32>
    %12 = arith.andi %8, %11 : vector<8x104xi1>
    %c1_i32 = arith.constant 1 : i32
    %13 = vector.broadcast %c1_i32 : i32 to vector<8x104xi32>
    %14 = arith.addi %5, %13 : vector<8x104xi32>
    %c49_i32_4 = arith.constant 49 : i32
    %15 = vector.broadcast %c49_i32_4 : i32 to vector<8x104xi32>
    %16 = arith.muli %14, %15 : vector<8x104xi32>
    %17 = arith.cmpi slt, %6, %16 : vector<8x104xi32>
    %18 = arith.andi %12, %17 : vector<8x104xi1>
    %cst_5 = arith.constant 0.0204081628 : f32
    %cst_6 = arith.constant 0.000000e+00 : f32
    %19 = vector.broadcast %cst_5 : f32 to vector<8x104xf32>
    %20 = vector.broadcast %cst_6 : f32 to vector<8x104xf32>
    %21 = arith.select %18, %19, %20 : vector<8x104xi1>, vector<8x104xf32>
    %cst_7 = arith.constant dense<0.000000e+00> : vector<8x128xf32>
    %22 = tpu.matmul %21, %4, %cst_7 {dimension_numbers = #tpu.dot_dimension_numbers<[1], [0], [0], [1], [0, 0, 1, 1], [], []>} : vector<8x104xf32>, vector<104x128xf32>, vector<8x128xf32> -> vector<8x128xf32>
    %23 = arith.truncf %22 : vector<8x128xf32> to vector<8x128xbf16>
    %c0_8 = arith.constant 0 : index
    %c0_9 = arith.constant 0 : index
    %24 = vector.load %arg2[%c0_8, %c0_9] : memref<128x128xbf16, #tpu.memory_space<vmem>>, vector<128x128xbf16>
    %cst_10 = arith.constant dense<0.000000e+00> : vector<8x128xf32>
    %25 = tpu.matmul %23, %24, %cst_10 {dimension_numbers = #tpu.dot_dimension_numbers<[1], [0], [0], [1], [0, 0, 1, 1], [], []>} : vector<8x128xbf16>, vector<128x128xbf16>, vector<8x128xf32> -> vector<8x128xf32>
    %c0_11 = arith.constant 0 : index
    %c0_12 = arith.constant 0 : index
    %26 = vector.load %arg3[%c0_11, %c0_12] : memref<1x128xf32, #tpu.memory_space<vmem>>, vector<1x128xf32>
    %27 = vector.broadcast %26 : vector<1x128xf32> to vector<8x128xf32>
    %28 = arith.mulf %25, %27 : vector<8x128xf32>
    %c0_13 = arith.constant 0 : index
    %c0_14 = arith.constant 0 : index
    %29 = vector.load %arg4[%c0_13, %c0_14] : memref<1x128xf32, #tpu.memory_space<vmem>>, vector<1x128xf32>
    %30 = vector.broadcast %29 : vector<1x128xf32> to vector<8x128xf32>
    %31 = arith.addf %28, %30 : vector<8x128xf32>
    %c0_15 = arith.constant 0 : index
    %c0_16 = arith.constant 0 : index
    %32 = vector.load %arg5[%c0_15, %c0_16] : memref<8x128xf32, #tpu.memory_space<vmem>>, vector<8x128xf32>
    tpu.vector_store %arg5[%c0_15, %c0_16], %31 {strides = array<i32>} : memref<8x128xf32, #tpu.memory_space<vmem>>, vector<8x128xf32>,
    return
  }
}

</mosaic_0001>

<bundles_post_ra>
// kernel: encoder_forward.2
= control target key start
LH: loop header
LB: loop body
LE: loop exit
PB: predicated region body
PF: predicated region fallthrough
CT: control target
= control target key end

     0   :  { %s2777_s0 = inlined_call_operand.vmem [shape: bf16[64,32], index: 0, kind: input, shape index: {}]   ;;  %s2778_s1 = inlined_call_operand.<no memory space> [shape: bf16[], index: 1, kind: input, shape index: {}]   ;;  %s2779_s2 = inlined_call_operand.<no memory space> [shape: s32[], index: 2, kind: input, shape index: {}]   ;;  %s2780_s3 = inlined_call_operand.<no memory space> [shape: s32[], index: 3, kind: input, shape index: {}]   ;;  %s2781_s4 = inlined_call_operand.vmem [shape: bf16[98,48], index: 4, kind: input, shape index: {}]   ;;  %s2782_s5 = inlined_call_operand.<no memory space> [shape: bf16[], index: 5, kind: input, shape index: {}]   ;;  %s2783_s6 = inlined_call_operand.vmem [shape: bf16[1,64], index: 6, kind: input, shape index: {}]   ;;  %s2784_s7 = inlined_call_operand.<no memory space> [shape: bf16[], index: 7, kind: input, shape index: {}]   ;;  %s2785_s8 = inlined_call_operand.<no memory space> [shape: s32[], index: 8, kind: input, shape index: {}]   ;;  %s2786_s9 = inlined_call_operand.vmem [shape: bf16[48,64], index: 9, kind: input, shape index: {}]   ;;  %s2787_s10 = inlined_call_operand.vmem [shape: f32[1,32], index: 10, kind: input, shape index: {}]   ;;  %s2788_s11 = inlined_call_operand.<no memory space> [shape: f32[], index: 11, kind: input, shape index: {}]   ;;  %s2789_s12 = inlined_call_operand.vmem [shape: f32[1,32], index: 12, kind: input, shape index: {}]   ;;  %s2790_s13 = inlined_call_operand.vmem [shape: f32[8,128], index: 13, kind: output, shape index: {}]  }
   0x1   :  { %v2288_v0 = vstv %s2779_s2  ;;  %v2293_v1 = vstv %s2780_s3  ;;  %v20_v2 = vstv %s2782_s5  ;;  %v25_v3 = vstv %s2778_s1 }
   0x2   :  { %v2301_v4 = vunpack.i.l.bf16 %v20_v2  ;;  %v2303_v5 = vunpack.i.l.bf16 %v25_v3  ;;  %v30_v6 = vstv %s2784_s7  ;;  %v35_v7 = vstv %s2785_s8 }
   0x3   :  { %v2311_v8 = vunpack.i.l.bf16 %v30_v6  ;;  %v2316_v9 = vstv %s2788_s11 }
   0x4   :  { %v107_v10 = vlaneseq  ;;  %v821_v11 = vld [vmem:[%s2786_s9] sm:$0xff]   ;;  %v1981_v12 = vld [vmem:[%s2786_s9 + $0x8] sm:$0xff]   ;;  %v2327_v13 = vld [vmem:[%s2786_s9 + $0x10] sm:$0xff]   ;;  %v2212_v14 = vmov 0.0   ;;  %vm2213_vm0 = vmmov 0  }
   0x5   :  { %2087 = vmatprep.subr.bf16.mxu0 %v2212_v14  ;;  %v822_v15 = vunpack.c.l.bf16 %v821_v11  ;;  %v884_v16 = vunpack.c.h.bf16 %v821_v11  ;;  %v947_v17 = vunpack.c.l.bf16 %v1981_v12  ;;  %v1010_v18 = vunpack.c.h.bf16 %v1981_v12  ;;  %v2333_v19 = vld [vmem:[%s2783_s6] ss:$0 sm:$0x3]  ;;  %2095 = vmatprep.mubr.msk.bf16.mxu0 %vm2213_vm0, %v2212_v14  ;;  %v2345_v21 = vld [vmem:[%s2781_s4 + $0x8] sm:$0xff]  }
   0x6   :  { %v2340_v20 = vld [vmem:[%s2781_s4] sm:$0xff]   ;;  %v2347_v22 = vand.u32 127, %v107_v10  ;;  %v2349_v23 = vshrl.u32 %v107_v10, 7  ;;  %v1073_v24 = vunpack.c.l.bf16 %v2327_v13  ;;  %v1136_v25 = vunpack.c.h.bf16 %v2327_v13  ;;  %2149 = vmatprep.mubr.msk.f32.mxu1 %vm2213_vm0, %v2212_v14 }
   0x7   :  { %v808_v26 = vunpack.i.l.bf16 %v2333_v19  ;;  %v100_v27 = vunpack.c.l.bf16 %v2340_v20  ;;  %v154_v28 = vunpack.c.h.bf16 %v2340_v20  ;;  %v209_v29 = vunpack.c.l.bf16 %v2345_v21 }
   0x8   :  { %v2360_v30 = vadd.s32 8, %v2349_v23  ;;  %vm827_vm1 = vcmp.lt.s32.totalorder %v2347_v22, 64  ;;  %vm835_vm2 = vcmp.lt.s32.totalorder %v2349_v23, %v2288_v0  ;;  %vm2366_vm3 = vcmp.lt.s32.totalorder %v2347_v22, %v35_v7 }
   0x9   :  { %v828_v32 = vsel %vm827_vm1, %v822_v15, %v2311_v8  ;;  %vm1976_vm4 = vmand %vm835_vm2, %vm2366_vm3  ;;  %v859_v33 = vsel %vm835_vm2, %v2311_v8, %v2303_v5  ;;  %v890_v34 = vsel %vm827_vm1, %v884_v16, %v2311_v8  ;;  %v2381_v35 = vadd.s32 16, %v2349_v23 }
   0xa   :  { %v850_v36 = vsel %vm835_vm2, %v828_v32, %v2303_v5  ;;  %v864_v37 = vsel %vm1976_vm4, %v859_v33, %v2303_v5  ;;  %vm897_vm5 = vcmp.lt.s32.totalorder %v2360_v30, %v2288_v0  ;;  %v2388_v38 = vadd.s32 24, %v2349_v23 }
   0xb   :  { %v855_v39 = vsel %vm1976_vm4, %v850_v36, %v2303_v5  ;;  %vm1979_vm6 = vmand %vm897_vm5, %vm2366_vm3  ;;  %v912_v40 = vsel %vm897_vm5, %v890_v34, %v2303_v5  ;;  %v921_v41 = vsel %vm897_vm5, %v2311_v8, %v2303_v5  ;;  %v953_v42 = vsel %vm827_vm1, %v947_v17, %v2311_v8 }
   0xc   :  { %v868_v43 = vmax.f32 %v855_v39, %v864_v37  ;;  %v917_v44 = vsel %vm1979_vm6, %v912_v40, %v2303_v5  ;;  %v926_v45 = vsel %vm1979_vm6, %v921_v41, %v2303_v5  ;;  %vm960_vm7 = vcmp.lt.s32.totalorder %v2381_v35, %v2288_v0 }
   0xd   :  { %v930_v46 = vmax.f32 %v917_v44, %v926_v45  ;;  %vm1982_vm8 = vmand %vm960_vm7, %vm2366_vm3  ;;  %v975_v47 = vsel %vm960_vm7, %v953_v42, %v2303_v5  ;;  %v984_v48 = vsel %vm960_vm7, %v2311_v8, %v2303_v5  ;;  %v1016_v49 = vsel %vm827_vm1, %v1010_v18, %v2311_v8 }
   0xe   :  { %v870_v50 = vpack.c.bf16 %v2212_v14, %v868_v43  ;;  %v980_v51 = vsel %vm1982_vm8, %v975_v47, %v2303_v5  ;;  %v989_v52 = vsel %vm1982_vm8, %v984_v48, %v2303_v5  ;;  %vm1023_vm9 = vcmp.lt.s32.totalorder %v2388_v38, %v2288_v0 }
   0xf   :  { %v933_v53 = vpack.c.bf16 %v2212_v14, %v930_v46  ;;  %v993_v54 = vmax.f32 %v980_v51, %v989_v52  ;;  %vm1985_vm10 = vmand %vm1023_vm9, %vm2366_vm3  ;;  %v1038_v55 = vsel %vm1023_vm9, %v1016_v49, %v2303_v5  ;;  %v1047_v56 = vsel %vm1023_vm9, %v2311_v8, %v2303_v5  ;;  %v1949_v46 = vld [vmem:[%s2781_s4 + $0x10] sm:$0xff]   ;;  %v1955_v51 = vld [vmem:[%s2781_s4 + $0x18] sm:$0xff]  }
  0x10   :  { %872 = vst [vmem:[#allocation33] sm:$0xf] %v870_v50  ;;  %v1043_v57 = vsel %vm1985_vm10, %v1038_v55, %v2303_v5  ;;  %v1052_v58 = vsel %vm1985_vm10, %v1047_v56, %v2303_v5  ;;  %v2425_v59 = vadd.s32 32, %v2349_v23  ;;  %v2428_v60 = vadd.s32 40, %v2349_v23 }
  0x11   :  { %935 = vst [vmem:[#allocation33 + $0x4] sm:$0xf] %v933_v53  ;;  %v996_v61 = vpack.c.bf16 %v2212_v14, %v993_v54  ;;  %v1056_v62 = vmax.f32 %v1043_v57, %v1052_v58  ;;  %v1079_v63 = vsel %vm827_vm1, %v1073_v24, %v2311_v8  ;;  %v1142_v2 = vsel %vm827_vm1, %v1136_v25, %v2311_v8 }
  0x12   :  { %vm1086_vm11 = vcmp.lt.s32.totalorder %v2425_v59, %v2288_v0  ;;  %vm1149_vm12 = vcmp.lt.s32.totalorder %v2428_v60, %v2288_v0  ;;  %v2442_v3 = vadd.s32 48, %v2349_v23  ;;  %v2445_v6 = vadd.s32 56, %v2349_v23 }
  0x13   :  { %998 = vst [vmem:[#allocation33 + $0x8] sm:$0xf] %v996_v61  ;;  %v1059_v7 = vpack.c.bf16 %v2212_v14, %v1056_v62  ;;  %vm1988_vm13 = vmand %vm1086_vm11, %vm2366_vm3  ;;  %v1101_v10 = vsel %vm1086_vm11, %v1079_v63, %v2303_v5  ;;  %v1110_v11 = vsel %vm1086_vm11, %v2311_v8, %v2303_v5  ;;  %v1164_v12 = vsel %vm1149_vm12, %v1142_v2, %v2303_v5  ;;  %v1961_v62 = vld [vmem:[%s2781_s4 + $0x20] sm:$0xff]  }
  0x14   :  { %v1106_v13 = vsel %vm1988_vm13, %v1101_v10, %v2303_v5  ;;  %v1115_v15 = vsel %vm1988_vm13, %v1110_v11, %v2303_v5  ;;  %vm1991_vm14 = vmand %vm1149_vm12, %vm2366_vm3  ;;  %v1173_v16 = vsel %vm1149_vm12, %v2311_v8, %v2303_v5  ;;  %vm1191_vm15 = vcmp.lt.s32.totalorder %v2442_v3, 49 }
  0x15   :  { %1061 = vst [vmem:[#allocation33 + $0xc] sm:$0xf] %v1059_v7  ;;  %v1119_v17 = vmax.f32 %v1106_v13, %v1115_v15  ;;  %v1169_v18 = vsel %vm1991_vm14, %v1164_v12, %v2303_v5  ;;  %v1178_v24 = vsel %vm1991_vm14, %v1173_v16, %v2303_v5  ;;  %v1192_v25 = vsel %vm1191_vm15, %v808_v26, %v2311_v8 }
  0x16   :  { %v1182_v32 = vmax.f32 %v1169_v18, %v1178_v24  ;;  %v1197_v33 = vsel %vm827_vm1, %v1192_v25, %v2311_v8  ;;  %vm1204_vm2 = vcmp.lt.s32.totalorder %v2442_v3, %v2288_v0  ;;  %vm1249_vm4 = vcmp.lt.s32.totalorder %v2445_v6, %v2288_v0  ;;  %v1967_v24 = vld [vmem:[%s2781_s4 + $0x28] sm:$0xff]  }
  0x17   :  { %v1122_v34 = vpack.c.bf16 %v2212_v14, %v1119_v17  ;;  %vm1993_vm5 = vmand %vm1204_vm2, %vm2366_vm3  ;;  %v1219_v19 = vsel %vm1204_vm2, %v2311_v8, %v2303_v5  ;;  %v1228_v26 = vsel %vm1204_vm2, %v1197_v33, %v2303_v5  ;;  %v1264_v36 = vsel %vm1249_vm4, %v2311_v8, %v2303_v5 }
  0x18   :  { %v2193_v37 = vld [vmem:[#allocation33] sm:$0xff]   ;;  %v1185_v39 = vpack.c.bf16 %v2212_v14, %v1182_v32  ;;  %v1224_v40 = vsel %vm1993_vm5, %v1219_v19, %v2303_v5  ;;  %v1233_v41 = vsel %vm1993_vm5, %v1228_v26, %v2303_v5  ;;  %vm1995_vm1 = vmand %vm1249_vm4, %vm2366_vm3  ;;  %vm110_vm6 = vcmp.lt.s32.totalorder %v2347_v22, 48 }
  0x19   :  { %1124 = vst [vmem:[#allocation33 + $0x10] sm:$0xf] %v1122_v34  ;;  %v1237_v42 = vmax.f32 %v1224_v40, %v1233_v41  ;;  %v1269_v43 = vsel %vm1995_vm1, %v1264_v36, %v2303_v5  ;;  %v111_v8 = vsel %vm110_vm6, %v100_v27, %v2301_v4  ;;  %vm118_vm7 = vcmp.lt.s32.totalorder %v2349_v23, %v2293_v1 }
  0x1a   :  { %2088 = vmatpush3.bf16.msra.mxu0 %v2193_v37  ;;  %1187 = vst [vmem:[#allocation33 + $0x14] sm:$0xf] %v1185_v39  ;;  %v1285_v31 = vpack.c.bf16 %v2212_v14, %v1269_v43  ;;  %vm2498_vm3 = vcmp.lt.s32.totalorder %v2347_v22, %v2288_v0  ;;  %v133_v45 = vsel %vm118_vm7, %v111_v8, %v2303_v5  ;;  %v264_v49 = vunpack.c.h.bf16 %v2345_v21 }
  0x1b   :  { %v165_v27 = vsel %vm110_vm6, %v154_v28, %v2301_v4  ;;  %2089 = vmatprep.subr.bf16.mxu0 %v2212_v14  ;;  %v1240_v47 = vpack.c.bf16 %v2212_v14, %v1237_v42  ;;  %vm1938_vm8 = vmand %vm118_vm7, %vm2498_vm3  ;;  %vm172_vm9 = vcmp.lt.s32.totalorder %v2360_v30, %v2293_v1  ;;  %v220_v0 = vsel %vm110_vm6, %v209_v29, %v2301_v4  ;;  %v1973_v42 = vld [vmem:[%s2781_s4 + $0x30] sm:$0xf] }
  0x1c   :  { %vm227_vm10 = vcmp.lt.s32.totalorder %v2381_v35, %v2293_v1  ;;  %v2194_v20 = vld [vmem:[#allocation33 + $0x8] sm:$0xff]   ;;  %1287 = vst [vmem:[#allocation33 + $0x1c] sm:$0xf] %v1285_v31  ;;  %v138_v28 = vsel %vm1938_vm8, %v133_v45, %v2303_v5  ;;  %vm1941_vm11 = vmand %vm172_vm9, %vm2498_vm3  ;;  %v187_v48 = vsel %vm172_vm9, %v165_v27, %v2303_v5  ;;  %vm282_vm13 = vcmp.lt.s32.totalorder %v2388_v38, %v2293_v1 }
  0x1d   :  { %v242_v30 = vsel %vm227_vm10, %v220_v0, %v2303_v5  ;;  %1242 = vst [vmem:[#allocation33 + $0x18] sm:$0xf] %v1240_v47  ;;  %v140_v50 = vpack.c.bf16 %v2212_v14, %v138_v28  ;;  %v192_v29 = vsel %vm1941_vm11, %v187_v48, %v2303_v5  ;;  %vm1944_vm12 = vmand %vm227_vm10, %vm2498_vm3  ;;  %v319_v35 = vunpack.c.l.bf16 %v1949_v46 }
  0x1e   :  { %2090 = vmatpush3.bf16.msra.mxu0 %v2194_v20  ;;  %v195_v52 = vpack.c.bf16 %v2212_v14, %v192_v29  ;;  %v247_v21 = vsel %vm1944_vm12, %v242_v30, %v2303_v5  ;;  %v275_v53 = vsel %vm110_vm6, %v264_v49, %v2301_v4  ;;  %vm2546_vm14 = vmand %vm282_vm13, %vm2498_vm3  ;;  %vm337_vm15 = vcmp.lt.s32.totalorder %v2425_v59, %v2293_v1 }
  0x1f   :  { %2091 = vmatprep.subr.bf16.mxu0 %v2212_v14  ;;  %142 = vst [vmem:[#allocation32] sm:$0xf] %v140_v50  ;;  %vm1599_vm2 = vcmask 523264   ;;  %v250_v38 = vpack.c.bf16 %v2212_v14, %v247_v21  ;;  %v297_v55 = vsel %vm282_vm13, %v275_v53, %v2303_v5  ;;  %v330_v56 = vsel %vm110_vm6, %v319_v35, %v2301_v4  ;;  %vm1950_vm4 = vmand %vm337_vm15, %vm2498_vm3 }
  0x20   :  { %v374_v57 = vunpack.c.h.bf16 %v1949_v46  ;;  %197 = vst [vmem:[#allocation32 + $0x4] sm:$0xf] %v195_v52  ;;  %v302_v58 = vsel %vm2546_vm14, %v297_v55, %v2303_v5  ;;  %v352_v59 = vsel %vm337_vm15, %v330_v56, %v2303_v5  ;;  %vm392_vm5 = vcmp.lt.s32.totalorder %v2428_v60, %v2293_v1 }
  0x21   :  { %v429_v61 = vunpack.c.l.bf16 %v1955_v51  ;;  %v2195_v63 = vld [vmem:[#allocation33 + $0x10] sm:$0xff]   ;;  %252 = vst [vmem:[#allocation32 + $0x8] sm:$0xf] %v250_v38  ;;  %v305_v2 = vpack.c.bf16 %v2212_v14, %v302_v58  ;;  %v357_v7 = vsel %vm1950_vm4, %v352_v59, %v2303_v5  ;;  %vm2576_vm1 = vmand %vm392_vm5, %vm2498_vm3  ;;  %vm447_vm7 = vcmp.lt.s32.totalorder %v2442_v3, %v2293_v1 }
  0x22   :  { %v385_v10 = vsel %vm110_vm6, %v374_v57, %v2301_v4  ;;  %v360_v60 = vpack.c.bf16 %v2212_v14, %v357_v7  ;;  %vm2589_vm8 = vmand %vm447_vm7, %vm2498_vm3  ;;  %v484_v16 = vunpack.c.h.bf16 %v1955_v51  ;;  %2092 = vmatpush3.bf16.msra.mxu0 %v2195_v63  ;;  %vm502_vm9 = vcmp.lt.s32.totalorder %v2445_v6, %v2293_v1  ;;  %v1297_v7 = vld [vmem:[%s2777_s0] sm:$0xff]  }
  0x23   :  { %v407_v12 = vsel %vm392_vm5, %v385_v10, %v2303_v5  ;;  %v440_v13 = vsel %vm110_vm6, %v429_v61, %v2301_v4  ;;  %307 = vst [vmem:[#allocation32 + $0xc] sm:$0xf] %v305_v2  ;;  %v539_v18 = vunpack.c.l.bf16 %v1961_v62  ;;  %2093 = vmatprep.subr.bf16.mxu0 %v2212_v14  ;;  %vm1959_vm10 = vmand %vm502_vm9, %vm2498_vm3  ;;  %v554_v6 = vadd.s32 64, %v2349_v23 }
  0x24   :  { %v412_v3 = vsel %vm2576_vm1, %v407_v12, %v2303_v5  ;;  %v462_v17 = vsel %vm447_vm7, %v440_v13, %v2303_v5  ;;  %v2196_v25 = vld [vmem:[#allocation33 + $0x18] sm:$0xff]   ;;  %362 = vst [vmem:[#allocation32 + $0x10] sm:$0xf] %v360_v60  ;;  %v495_v34 = vsel %vm110_vm6, %v484_v16, %v2301_v4  ;;  %v594_v37 = vunpack.c.h.bf16 %v1961_v62 }
  0x25   :  { %v415_v32 = vpack.c.bf16 %v2212_v14, %v412_v3  ;;  %v467_v33 = vsel %vm2589_vm8, %v462_v17, %v2303_v5  ;;  %v517_v26 = vsel %vm502_vm9, %v495_v34, %v2303_v5  ;;  %v550_v36 = vsel %vm110_vm6, %v539_v18, %v2301_v4  ;;  %v1998_v60 = vld [vmem:[%s2777_s0 + $0x8] sm:$0xff]  }
  0x26   :  { %v470_v19 = vpack.c.bf16 %v2212_v14, %v467_v33  ;;  %v522_v39 = vsel %vm1959_vm10, %v517_v26, %v2303_v5  ;;  %vm557_vm11 = vcmp.lt.s32.totalorder %v554_v6, %v2293_v1  ;;  %v609_v40 = vadd.s32 72, %v2349_v23  ;;  %2094 = vmatpush3.bf16.msra.mxu0 %v2196_v25  ;;  %v2000_v33 = vld [vmem:[%s2777_s0 + $0x10] sm:$0xff]  }
  0x27   :  { %417 = vst [vmem:[#allocation32 + $0x14] sm:$0xf] %v415_v32  ;;  %v649_v41 = vunpack.c.l.bf16 %v1967_v24  ;;  %v2197_v43 = vld [vmem:[#allocation32] sm:$0xff]   ;;  %v525_v8 = vpack.c.bf16 %v2212_v14, %v522_v39  ;;  %vm1962_vm12 = vmand %vm557_vm11, %vm2498_vm3  ;;  %v572_v31 = vsel %vm557_vm11, %v550_v36, %v2303_v5  ;;  %v605_v45 = vsel %vm110_vm6, %v594_v37, %v2301_v4  ;;  %v2002_v39 = vld [vmem:[%s2777_s0 + $0x18] sm:$0xff]  }
  0x28   :  { %472 = vst [vmem:[#allocation32 + $0x18] sm:$0xf] %v470_v19  ;;  %v664_v27 = vadd.s32 80, %v2349_v23  ;;  %v577_v46 = vsel %vm1962_vm12, %v572_v31, %v2303_v5  ;;  %vm612_vm13 = vcmp.lt.s32.totalorder %v609_v40, %v2293_v1  ;;  %v704_v0 = vunpack.c.h.bf16 %v1967_v24 }
  0x29   :  { %v660_v47 = vsel %vm110_vm6, %v649_v41, %v2301_v4  ;;  %527 = vst [vmem:[#allocation32 + $0x1c] sm:$0xf] %v525_v8  ;;  %v580_v20 = vpack.c.bf16 %v2212_v14, %v577_v46  ;;  %vm1965_vm14 = vmand %vm612_vm13, %vm2498_vm3  ;;  %v627_v28 = vsel %vm612_vm13, %v605_v45, %v2303_v5  ;;  %v719_v48 = vadd.s32 88, %v2349_v23  ;;  %2096 = vmatmul.mubr.msk.bf16.vlgmr.msra.gmra.mrb[0].mxu0 %vm1599_vm2, %v2197_v43 }
  0x2a   :  { %vm667_vm15 = vcmp.lt.s32.totalorder %v664_v27, %v2293_v1  ;;  %v632_v30 = vsel %vm1965_vm14, %v627_v28, %v2303_v5  ;;  %v715_v50 = vsel %vm110_vm6, %v704_v0, %v2301_v4  ;;  %v759_v29 = vunpack.c.l.bf16 %v1973_v42  ;;  %2099 = vmatprep.mubr.msk.bf16.mxu0 %vm2213_vm0, %v2212_v14  ;;  %v2198_v38 = vld [vmem:[#allocation32 + $0x8] sm:$0xff]  }
  0x2b   :  { %vm1968_vm4 = vmand %vm667_vm15, %vm2498_vm3  ;;  %v682_v49 = vsel %vm667_vm15, %v660_v47, %v2303_v5  ;;  %582 = vst [vmem:[#allocation32 + $0x20] sm:$0xf] %v580_v20  ;;  %v635_v35 = vpack.c.bf16 %v2212_v14, %v632_v30  ;;  %vm722_vm5 = vcmp.lt.s32.totalorder %v719_v48, %v2293_v1  ;;  %v763_v52 = vadd.s32 96, %v2349_v23 }
  0x2c   :  { %v687_v51 = vsel %vm1968_vm4, %v682_v49, %v2303_v5  ;;  %vm1971_vm1 = vmand %vm722_vm5, %vm2498_vm3  ;;  %v737_v53 = vsel %vm722_vm5, %v715_v50, %v2303_v5  ;;  %v2214_v2 = vmov 0.0|0.0   ;;  %v1298_v10 = vunpack.c.l.bf16 %v1297_v7 }
  0x2d   :  { %v690_v21 = vpack.c.bf16 %v2212_v14, %v687_v51  ;;  %637 = vst [vmem:[#allocation32 + $0x24] sm:$0xf] %v635_v35  ;;  %v742_v54 = vsel %vm1971_vm1, %v737_v53, %v2303_v5  ;;  %vm764_vm7 = vcmp.lt.s32.totalorder %v763_v52, 98  ;;  %vm777_vm8 = vcmp.lt.s32.totalorder %v763_v52, %v2293_v1  ;;  %2172 = vmatprep.subr.bf16.mxu1 %v2214_v2 }
  0x2e   :  { %v745_v55 = vpack.c.bf16 %v2212_v14, %v742_v54  ;;  %v765_v56 = vsel %vm764_vm7, %v759_v29, %v2301_v4  ;;  %vm1974_vm9 = vmand %vm777_vm8, %vm2498_vm3  ;;  %v2199_v61 = vld [vmem:[#allocation32 + $0x10] sm:$0xff]   ;;  %v1319_v11 = vunpack.c.h.bf16 %v1297_v7  ;;  %v1341_v15 = vunpack.c.l.bf16 %v1998_v60 }
  0x2f   :  { %692 = vst [vmem:[#allocation32 + $0x28] sm:$0xf] %v690_v21  ;;  %v770_v57 = vsel %vm110_vm6, %v765_v56, %v2301_v4  ;;  %vm1303_vm6 = vcmp.lt.s32.totalorder %v2347_v22, 32  ;;  %v1363_v16 = vunpack.c.h.bf16 %v1998_v60  ;;  %v1385_v34 = vunpack.c.l.bf16 %v2000_v33 }
  0x30   :  { %747 = vst [vmem:[#allocation32 + $0x2c] sm:$0xf] %v745_v55  ;;  %v792_v58 = vsel %vm777_vm8, %v770_v57, %v2303_v5  ;;  %v2200_v4 = vld [vmem:[#allocation32 + $0x18] sm:$0xff]   ;;  %v1304_v12 = vsel %vm1303_vm6, %v1298_v10, %v2303_v5  ;;  %v1325_v13 = vsel %vm1303_vm6, %v1319_v11, %v2303_v5  ;;  %v1347_v18 = vsel %vm1303_vm6, %v1341_v15, %v2303_v5 }
  0x31   :  { %v797_v59 = vsel %vm1974_vm9, %v792_v58, %v2303_v5  ;;  %2100 = vmatmul.mubr.msk.bf16.gmra.mrb[4].mxu0 %vm1599_vm2, %v2198_v38  ;;  %v1305_v3 = vpack.c.bf16 %v2212_v14, %v1304_v12  ;;  %v1327_v17 = vpack.c.bf16 %v2212_v14, %v1325_v13  ;;  %v1369_v24 = vsel %vm1303_vm6, %v1363_v16, %v2303_v5 }
  0x32   :  { %v800_v1 = vpack.c.bf16 %v2212_v14, %v797_v59  ;;  %2103 = vmatprep.mubr.msk.bf16.mxu0 %vm2213_vm0, %v2212_v14  ;;  %v1349_v25 = vpack.c.bf16 %v2212_v14, %v1347_v18  ;;  %v1371_v32 = vpack.c.bf16 %v2212_v14, %v1369_v24  ;;  %v1407_v6 = vunpack.c.h.bf16 %v2000_v33 }
  0x33   :  { %1307 = vst [vmem:[#allocation34] sm:$0xf] %v1305_v3  ;;  %1329 = vst [vmem:[#allocation34 + $0x4] sm:$0xf] %v1327_v17  ;;  %v1391_v19 = vsel %vm1303_vm6, %v1385_v34, %v2303_v5  ;;  %v1429_v40 = vunpack.c.l.bf16 %v2002_v39  ;;  %v1451_v41 = vunpack.c.h.bf16 %v2002_v39  ;;  %v2036_v45 = vpack.c.bf16 %v2303_v5, %v2303_v5 }
  0x34   :  { %802 = vst [vmem:[#allocation32 + $0x30] sm:$0xf] %v800_v1  ;;  %v2201_v44 = vld [vmem:[#allocation32 + $0x20] sm:$0xff]   ;;  %1351 = vst [vmem:[#allocation34 + $0x8] sm:$0xf] %v1349_v25  ;;  %v1413_v26 = vsel %vm1303_vm6, %v1407_v6, %v2303_v5  ;;  %v1393_v36 = vpack.c.bf16 %v2212_v14, %v1391_v19  ;;  %v1730_v12 = vadd.s32 1, %v2349_v23 }
  0x35   :  { %1373 = vst [vmem:[#allocation34 + $0xc] sm:$0xf] %v1371_v32  ;;  %v1415_v37 = vpack.c.bf16 %v2212_v14, %v1413_v26  ;;  %v1435_v42 = vsel %vm1303_vm6, %v1429_v40, %v2303_v5  ;;  %v1457_v43 = vsel %vm1303_vm6, %v1451_v41, %v2303_v5  ;;  %2037 = vst [vmem:[#allocation34 + $0x20] sm:$0xff] %v2036_v45   ;;  %v1727_v13 = vmul.u32 49, %v2349_v23 }
  0x36   :  { %1395 = vst [vmem:[#allocation34 + $0x10] sm:$0xf] %v1393_v36  ;;  %v1437_v8 = vpack.c.bf16 %v2212_v14, %v1435_v42  ;;  %v1459_v31 = vpack.c.bf16 %v2212_v14, %v1457_v43  ;;  %2042 = vst [vmem:[#allocation34 + $0x28] sm:$0xff] %v2036_v45   ;;  %v1731_v16 = vmul.u32 49, %v1730_v12  ;;  %vm1726_vm3 = vcmp.lt.s32.totalorder %v2349_v23, 2 }
  0x37   :  { %v2202_v62 = vld [vmem:[#allocation32 + $0x28] sm:$0xff]   ;;  %1417 = vst [vmem:[#allocation34 + $0x14] sm:$0xf] %v1415_v37  ;;  %2047 = vst [vmem:[#allocation34 + $0x30] sm:$0xff] %v2036_v45   ;;  %vm1735_vm13 = vcmask 850944  }
  0x38   :  { %1439 = vst [vmem:[#allocation34 + $0x18] sm:$0xf] %v1437_v8  ;;  %1461 = vst [vmem:[#allocation34 + $0x1c] sm:$0xf] %v1459_v31  ;;  %vm1732_vm11 = vcmp.lt.s32.totalorder %v2347_v22, %v1731_v16 }
  0x39   :  { %2104 = vmatmul.mubr.msk.bf16.gmra.mrb[8].mxu0 %vm1599_vm2, %v2199_v61  ;;  %2052 = vst [vmem:[#allocation34 + $0x38] sm:$0xff] %v2036_v45   ;;  %v1494_v45 = vld [vmem:[%s2789_s12] sm:$0x1] }
  0x3a   :  { %2107 = vmatprep.mubr.msk.bf16.mxu0 %vm2213_vm0, %v2212_v14  ;;  %v2204_v26 = vld [vmem:[#allocation34] sm:$0xff]  }
  0x3b   :  { %v2203_v63 = vld [vmem:[#allocation32 + $0x30] ss:$0 sps:$4 sm:$0xff]  }
  0x3c   :  { %v2205_v39 = vld [vmem:[#allocation34 + $0x8] sm:$0xff]   ;;  %v2208_v42 = vld [vmem:[#allocation34 + $0x20] sm:$0xff]  }
  0x3d   :  { %v2209_v43 = vld [vmem:[#allocation34 + $0x28] sm:$0xff]  }
  0x3e   :  { %v2206_v40 = vld [vmem:[#allocation34 + $0x10] sm:$0xff]  }
  0x3f   :  { %v2207_v41 = vld [vmem:[#allocation34 + $0x18] sm:$0xff]   ;;  %v2210_v8 = vld [vmem:[#allocation34 + $0x30] sm:$0xff]  }
  0x40   :  { %v2211_v31 = vld [vmem:[#allocation34 + $0x38] sm:$0xff]  }
  0x41   :  { %2108 = vmatmul.mubr.msk.bf16.gmra.mrb[12].mxu0 %vm1599_vm2, %v2200_v4 }
  0x42   :  { %2111 = vmatprep.mubr.msk.bf16.mxu0 %vm2213_vm0, %v2212_v14 }
  0x49   :  { %2112 = vmatmul.mubr.msk.bf16.gmra.mrb[16].mxu0 %vm1599_vm2, %v2201_v44 }
  0x4a   :  { %2115 = vmatprep.mubr.msk.bf16.mxu0 %vm2213_vm0, %v2212_v14 }
  0x51   :  { %2116 = vmatmul.mubr.msk.bf16.gmra.mrb[20].mxu0 %vm1599_vm2, %v2202_v62 }
  0x52   :  { %2119 = vmatprep.mubr.msk.bf16.mxu0 %vm2213_vm0, %v2212_v14 }
  0x59   :  { %2120 = vmatmul.mubr.msk.bf16.gmra.mrb[24].mxu0 %vm1599_vm2, %v2203_v63  ;;  %vm1728_vm2 = vcmp.ge.s32.totalorder %v2347_v22, %v1727_v13 }
  0x5a   :  { %vm1729_vm10 = vmand %vm1726_vm3, %vm1728_vm2 }
  0x5b   :  { %vm1733_vm12 = vmand %vm1729_vm10, %vm1732_vm11 }
  0x5c   :  { %v1734_v19 = vsel %vm1733_vm12, 0.020408163, %v2212_v14 }
  0xfc   :  { %v1655_v27 = vpop.f32.mrb[0].mxu0 }
  0xfd   :  { %v2097_v46 = vpop.f32.mrb[1].mxu0  ;;  %v1709_v0 = vmax.f32 %v1655_v27, 0.0  ;;  %v1507_v27 = vld [vmem:[%s2787_s10] sm:$0x1] }
  0xfe   :  { %v1658_v47 = vpop.f32.mrb[2].mxu0 }
  0xff   :  { %v1710_v20 = vmax.f32 %v1658_v47, 0.0  ;;  %v2098_v28 = vpop.f32.mrb[3].mxu0 }
 0x101   :  { %v2173_v48 = vpack.c.bf16 %v1710_v20, %v1709_v0 }
 0x103   :  { %2174 = vmatpush3.bf16.msra.mxu1 %v2173_v48 }
 0x104   :  { %v1663_v30 = vpop.f32.mrb[4].mxu0  ;;  %2175 = vmatprep.subr.bf16.mxu1 %v2214_v2 }
 0x105   :  { %v2101_v49 = vpop.f32.mrb[5].mxu0  ;;  %v1711_v5 = vmax.f32 %v1663_v30, 0.0 }
 0x106   :  { %v1666_v50 = vpop.f32.mrb[6].mxu0 }
 0x107   :  { %v1712_v29 = vmax.f32 %v1666_v50, 0.0  ;;  %v2102_v35 = vpop.f32.mrb[7].mxu0 }
 0x109   :  { %v2176_v51 = vpack.c.bf16 %v1712_v29, %v1711_v5 }
 0x10b   :  { %2177 = vmatpush3.bf16.msra.mxu1 %v2176_v51 }
 0x10c   :  { %v1671_v52 = vpop.f32.mrb[8].mxu0  ;;  %2178 = vmatprep.subr.bf16.mxu1 %v2214_v2 }
 0x10d   :  { %v2105_v21 = vpop.f32.mrb[9].mxu0  ;;  %v1713_v54 = vmax.f32 %v1671_v52, 0.0 }
 0x10e   :  { %v1674_v53 = vpop.f32.mrb[10].mxu0 }
 0x10f   :  { %v1714_v38 = vmax.f32 %v1674_v53, 0.0  ;;  %v2106_v55 = vpop.f32.mrb[11].mxu0 }
 0x111   :  { %v2179_v56 = vpack.c.bf16 %v1714_v38, %v1713_v54 }
 0x113   :  { %2180 = vmatpush3.bf16.msra.mxu1 %v2179_v56 }
 0x114   :  { %v1679_v57 = vpop.f32.mrb[12].mxu0  ;;  %2181 = vmatprep.subr.bf16.mxu1 %v2214_v2 }
 0x115   :  { %v2109_v58 = vpop.f32.mrb[13].mxu0  ;;  %v1715_v1 = vmax.f32 %v1679_v57, 0.0 }
 0x116   :  { %v1682_v59 = vpop.f32.mrb[14].mxu0 }
 0x117   :  { %v1716_v61 = vmax.f32 %v1682_v59, 0.0  ;;  %v2110_v4 = vpop.f32.mrb[15].mxu0 }
 0x119   :  { %v2182_v44 = vpack.c.bf16 %v1716_v61, %v1715_v1 }
 0x11b   :  { %2183 = vmatpush3.bf16.msra.mxu1 %v2182_v44 }
 0x11c   :  { %v1687_v62 = vpop.f32.mrb[16].mxu0  ;;  %2184 = vmatprep.subr.bf16.mxu1 %v2214_v2 }
 0x11d   :  { %v2113_v63 = vpop.f32.mrb[17].mxu0  ;;  %v1717_v10 = vmax.f32 %v1687_v62, 0.0 }
 0x11e   :  { %v1690_v7 = vpop.f32.mrb[18].mxu0 }
 0x11f   :  { %v1718_v11 = vmax.f32 %v1690_v7, 0.0  ;;  %v2114_v60 = vpop.f32.mrb[19].mxu0 }
 0x121   :  { %v2185_v15 = vpack.c.bf16 %v1718_v11, %v1717_v10 }
 0x123   :  { %2186 = vmatpush3.bf16.msra.mxu1 %v2185_v15 }
 0x124   :  { %v1695_v3 = vpop.f32.mrb[20].mxu0  ;;  %2187 = vmatprep.subr.bf16.mxu1 %v2214_v2 }
 0x125   :  { %v2117_v17 = vpop.f32.mrb[21].mxu0  ;;  %v1719_v24 = vmax.f32 %v1695_v3, 0.0 }
 0x126   :  { %v1698_v18 = vpop.f32.mrb[22].mxu0 }
 0x127   :  { %v1720_v25 = vmax.f32 %v1698_v18, 0.0  ;;  %v2118_v32 = vpop.f32.mrb[23].mxu0 }
 0x129   :  { %v2188_v33 = vpack.c.bf16 %v1720_v25, %v1719_v24 }
 0x12b   :  { %2189 = vmatpush3.bf16.msra.mxu1 %v2188_v33 }
 0x12c   :  { %v1703_v34 = vpop.f32.mrb[24].mxu0  ;;  %2147 = vmatprep.subr.mxu1 %v2212_v14 }
 0x12d   :  { %v1721_v6 = vmax.f32 %v1703_v34, 0.0  ;;  %v2121_v2 = vpop.f32.mrb[25].mxu0 }
 0x12e   :  { %v1706_v36 = vpop.f32.mrb[26].mxu0 }
 0x12f   :  { %v2122_v37 = vpop.f32.mrb[27].mxu0  ;;  %2148 = vmatpush3.msra.mxu1 %v1721_v6 }
 0x130   :  { %2150 = vmatmul.mubr.msk.f32.vlgmr.msra.gmra.mrb[0].mxu1 %vm1735_vm13, %v1734_v19  ;;  %2152 = vmatprep.subr.bf16.mxu1 %v2212_v14 }
 0x131   :  { %2153 = vmatpush3.bf16.msra.mxu1 %v2204_v26  ;;  %2168 = vmatprep.mubr.msk.bf16.mxu1 %vm2213_vm0, %v2212_v14  ;;  %vm1498_vm0 = vcmp.lt.s32.totalorder %v2349_v23, 1 }
 0x132   :  { %2154 = vmatprep.subr.bf16.mxu1 %v2212_v14  ;;  %v1499_v46 = vsel %vm1498_vm0, %v1494_v45, %v2316_v9  ;;  %v1512_v47 = vsel %vm1498_vm0, %v1507_v27, %v2316_v9 }
 0x133   :  { %v1517_v0 = vsel %vm1303_vm6, %v1512_v47, %v2316_v9 }
 0x134   :  { %1519 = vst [vmem:[#allocation36] sm:$0x1] %v1517_v0 }
 0x135   :  { %2155 = vmatpush3.bf16.msra.mxu1 %v2205_v39 }
 0x136   :  { %2156 = vmatprep.subr.bf16.mxu1 %v2212_v14 }
 0x139   :  { %2157 = vmatpush3.bf16.msra.mxu1 %v2206_v40 }
 0x13a   :  { %2158 = vmatprep.subr.bf16.mxu1 %v2212_v14 }
 0x13b   :  { %v2032_v49 = vld [vmem:[#allocation36] ss:$0 sm:$0xff] }
 0x13d   :  { %2159 = vmatpush3.bf16.msra.mxu1 %v2207_v41 }
 0x13e   :  { %2160 = vmatprep.subr.bf16.mxu1 %v2212_v14 }
 0x141   :  { %2161 = vmatpush3.bf16.msra.mxu1 %v2208_v42 }
 0x142   :  { %2162 = vmatprep.subr.bf16.mxu1 %v2212_v14 }
 0x145   :  { %2163 = vmatpush3.bf16.msra.mxu1 %v2209_v43 }
 0x146   :  { %2164 = vmatprep.subr.bf16.mxu1 %v2212_v14 }
 0x149   :  { %2165 = vmatpush3.bf16.msra.mxu1 %v2210_v8 }
 0x14a   :  { %2166 = vmatprep.subr.bf16.mxu1 %v2212_v14  ;;  %v1504_v14 = vsel %vm1303_vm6, %v1499_v46, %v2316_v9 }
 0x14b   :  { %1506 = vst [vmem:[#allocation35] sm:$0x1] %v1504_v14 }
 0x14d   :  { %2167 = vmatpush3.bf16.msra.mxu1 %v2211_v31 }
 0x152   :  { %v2031_v48 = vld [vmem:[#allocation35] ss:$0 sm:$0xff] }
 0x203   :  { %v1805_v20 = vpop.f32.mrb[0].mxu1 }
 0x204   :  { %v1809_v23 = vpack.c.bf16 %v1805_v20, %v1805_v20  ;;  %v2151_v28 = vpop.f32.mrb[1].mxu1 }
 0x206   :  { %2169 = vmatmul.mubr.bf16.vlgmr.msra.gmra.mrb[4].mxu1 %v1809_v23 }
 0x2d9   :  { %v1908_v30 = vpop.f32.mrb[4].mxu1 }
 0x2da   :  { %v1921_v50 = vmul.f32 %v2031_v48, %v1908_v30  ;;  %v2170_v5 = vpop.f32.mrb[5].mxu1 }
 0x2db   :  { %v1911_v29 = vpop.f32.mrb[6].mxu1 }
 0x2dc   :  { %v1929_v35 = vadd.f32 %v2032_v49, %v1921_v50  ;;  %v2171_v51 = vpop.f32.mrb[7].mxu1 }
 0x2de   :  { %1930 = vst [vmem:[%s2790_s13] sm:$0xff] %v1929_v35 }

</bundles_post_ra>
